<compile_context>
chip_gen: v7x
topology: tpu7x:2x2x1
jax: 0.10.0
libtpu: 0.0.40
codegen_flags: <defaults>
</compile_context>

<pallas_src>
import jax
import jax.numpy as jnp
from jax import lax
from jax.experimental import pallas as pl
from jax.experimental.pallas import tpu as pltpu

EPS = 1e-5
LANE = 128


def _round_up(n, m=LANE):
    return ((n + m - 1) // m) * m


def _pad_to(arr, axis, target):
    pad = target - arr.shape[axis]
    if pad == 0:
        return arr
    widths = [(0, 0)] * arr.ndim
    widths[axis] = (0, pad)
    return jnp.pad(arr, widths)


def galaxies_kernel(
    x_ref,
    w1_ref, g1_ref, be1_ref,
    w2_ref, g2_ref, be2_ref,
    w3_ref, g3_ref, be3_ref,
    wo_ref, bo_ref,
    o_ref,
):
    inv_b = 1.0 / x_ref.shape[0]  # compile-time constant

    def bn_relu(h, gamma, beta):
        # Training-mode BatchNorm1d (batch stats, biased var) + ReLU.
        # Variance fused as E[h^2] - mean^2: two column sums, no extra
        # broadcast-subtract pass over (B, C).
        mean = jnp.sum(h, axis=0, keepdims=True) * inv_b
        mean_sq = jnp.sum(h * h, axis=0, keepdims=True) * inv_b
        var = jnp.maximum(mean_sq - mean * mean, 0.0)
        h_hat = (h - mean) * lax.rsqrt(var + EPS)
        return jnp.maximum(h_hat * gamma + beta, 0.0)

    x = x_ref[...]

    # layer_1 -> batchnorm1 -> relu        (b1 dropped: cancelled by BN mean sub)
    h = jnp.dot(x, w1_ref[...], preferred_element_type=jnp.float32)
    h = bn_relu(h, g1_ref[...], be1_ref[...])

    # layer_2 -> batchnorm2 -> relu -> (dropout: identity)
    h = jnp.dot(h.astype(w2_ref.dtype), w2_ref[...],
                preferred_element_type=jnp.float32)
    h = bn_relu(h, g2_ref[...], be2_ref[...])

    # layer_3 -> batchnorm3 -> relu -> (dropout: identity)
    h = jnp.dot(h.astype(w3_ref.dtype), w3_ref[...],
                preferred_element_type=jnp.float32)
    h = bn_relu(h, g3_ref[...], be3_ref[...])

    # layer_out (output bias kept)
    out = jnp.dot(h.astype(wo_ref.dtype), wo_ref[...],
                  preferred_element_type=jnp.float32)
    o_ref[...] = (out + bo_ref[...]).astype(o_ref.dtype)


def init_params(key, num_feature, num_class):
    """Deterministic init mimicking PyTorch Linear default (U[-1/sqrt(fan_in), +])."""
    dims = [num_feature, 512, 128, 64, num_class]
    params = []
    for i in range(4):
        fan_in, fan_out = dims[i], dims[i + 1]
        key, kw, kb = jax.random.split(key, 3)
        bound = 1.0 / jnp.sqrt(jnp.float32(fan_in))
        # stored pre-transposed: (in, out)
        w = jax.random.uniform(kw, (fan_in, fan_out), jnp.float32, -bound, bound)
        b = jax.random.uniform(kb, (1, fan_out), jnp.float32, -bound, bound)
        params.append((w, b))
    # BatchNorm affine params: gamma=1, beta=0 (PyTorch defaults), shape (1, C)
    bn = [
        (jnp.ones((1, 512), jnp.float32), jnp.zeros((1, 512), jnp.float32)),
        (jnp.ones((1, 128), jnp.float32), jnp.zeros((1, 128), jnp.float32)),
        (jnp.ones((1, 64), jnp.float32), jnp.zeros((1, 64), jnp.float32)),
    ]
    return params, bn


def galaxies_net_forward(x, params, bn, matmul_dtype=jnp.bfloat16):
    (w1, b1), (w2, b2), (w3, b3), (wo, bo) = params
    (g1, be1), (g2, be2), (g3, be3) = bn
    # b1/b2/b3 are constant per channel -> exactly cancelled by training-mode BN
    # mean subtraction; never shipped to the kernel.
    del b1, b2, b3

    B, F = x.shape
    num_class = wo.shape[1]
    f_pad = _round_up(F)             # 32  -> 128
    h3_pad = _round_up(w3.shape[1])  # 64  -> 128
    c_pad = _round_up(num_class)     # 4   -> 128

    # Lane-pad the narrow dims so all MXU tiles are full width and the output
    # store is lane-dense.  Padded rows/cols are zeros -> numerically inert.
    x_p = _pad_to(x, 1, f_pad).astype(matmul_dtype)
    w1_p = _pad_to(w1, 0, f_pad).astype(matmul_dtype)
    w2_p = w2.astype(matmul_dtype)
    w3_p = _pad_to(w3, 1, h3_pad).astype(matmul_dtype)
    g3_p = _pad_to(g3, 1, h3_pad)
    be3_p = _pad_to(be3, 1, h3_pad)
    wo_p = _pad_to(_pad_to(wo, 0, h3_pad), 1, c_pad).astype(matmul_dtype)
    bo_p = _pad_to(bo, 1, c_pad)

    args = (x_p, w1_p, g1, be1, w2_p, g2, be2, w3_p, g3_p, be3_p, wo_p, bo_p)
    vmem = pl.BlockSpec(memory_space=pltpu.MemorySpace.VMEM)

    out_padded = pl.pallas_call(
        galaxies_kernel,
        out_shape=jax.ShapeDtypeStruct((B, c_pad), jnp.float32),
        in_specs=[vmem] * len(args),
        out_specs=vmem,
    )(*args)
    return out_padded[:, :num_class]


def reference_forward_f32(x, params, bn):
    """Faithful f32 emulation of the PyTorch module (train-mode BN, dropout=identity)."""
    (w1, b1), (w2, b2), (w3, b3), (wo, bo) = params
    (g1, be1), (g2, be2), (g3, be3) = bn

    def bn_relu(h, g, be):
        m = jnp.mean(h, axis=0, keepdims=True)
        v = jnp.mean((h - m) ** 2, axis=0, keepdims=True)
        return jnp.maximum((h - m) / jnp.sqrt(v + EPS) * g + be, 0.0)

    h = bn_relu(x @ w1 + b1, g1, be1)
    h = bn_relu(h @ w2 + b2, g2, be2)
    h = bn_relu(h @ w3 + b3, g3, be3)
    return h @ wo + bo


def reference_forward_matched(x, params, bn, matmul_dtype=jnp.bfloat16):
    """Same math as the kernel: bf16 matmul inputs, fused variance, bias-free hidden layers."""
    (w1, _), (w2, _), (w3, _), (wo, bo) = params
    (g1, be1), (g2, be2), (g3, be3) = bn
    inv_b = 1.0 / x.shape[0]

    def dot(a, b):
        return jnp.dot(a.astype(matmul_dtype), b.astype(matmul_dtype),
                       preferred_element_type=jnp.float32)

    def bn_relu(h, g, be):
        m = jnp.sum(h, axis=0, keepdims=True) * inv_b
        msq = jnp.sum(h * h, axis=0, keepdims=True) * inv_b
        v = jnp.maximum(msq - m * m, 0.0)
        return jnp.maximum((h - m) * lax.rsqrt(v + EPS) * g + be, 0.0)

    h = bn_relu(dot(x, w1), g1, be1)
    h = bn_relu(dot(h, w2), g2, be2)
    h = bn_relu(dot(h, w3), g3, be3)
    return dot(h, wo) + bo


if __name__ == "__main__":
    num_feature, num_class, batch = 32, 4, 8

    key = jax.random.PRNGKey(0)
    kx, kp = jax.random.split(key)
    x = jax.random.normal(kx, (batch, num_feature), jnp.float32)
    params, bn = init_params(kp, num_feature, num_class)

    out = galaxies_net_forward(x, params, bn)
    out = jax.block_until_ready(out)
    assert out.shape == (batch, num_class)

    # Tight check against a JAX reference that uses the kernel's exact math.
    ref_matched = reference_forward_matched(x, params, bn)
    assert jnp.allclose(out, ref_matched, atol=1e-4, rtol=1e-4), \
        "mismatch vs matched (bf16-matmul) JAX reference"

    # Looser check against the f32 PyTorch-faithful reference (bf16 MXU inputs
    # + dropped-but-BN-cancelled hidden biases account for the small delta).
    ref_f32 = reference_forward_f32(x, params, bn)
    assert jnp.allclose(out, ref_f32, atol=3e-2, rtol=3e-2), \
        "mismatch vs f32 PyTorch-faithful reference"

    print("KERNEL_OK")
</pallas_src>

<mosaic_0001>
module attributes {stable_mosaic.version = 11 : i64} {
  func.func @galaxies_kernel(%arg0: memref<8x128xbf16, #tpu.memory_space<vmem>>, %arg1: memref<128x512xbf16, #tpu.memory_space<vmem>>, %arg2: memref<1x512xf32, #tpu.memory_space<vmem>>, %arg3: memref<1x512xf32, #tpu.memory_space<vmem>>, %arg4: memref<512x128xbf16, #tpu.memory_space<vmem>>, %arg5: memref<1x128xf32, #tpu.memory_space<vmem>>, %arg6: memref<1x128xf32, #tpu.memory_space<vmem>>, %arg7: memref<128x128xbf16, #tpu.memory_space<vmem>>, %arg8: memref<1x128xf32, #tpu.memory_space<vmem>>, %arg9: memref<1x128xf32, #tpu.memory_space<vmem>>, %arg10: memref<128x128xbf16, #tpu.memory_space<vmem>>, %arg11: memref<1x128xf32, #tpu.memory_space<vmem>>, %arg12: memref<8x128xf32, #tpu.memory_space<vmem>>) attributes {dimension_semantics = [], scalar_prefetch = 0 : i64, scratch_operands = 0 : i64, tpu.core_type = #tpu.core_type<tc>} {
    %c0 = arith.constant 0 : index
    %c0_0 = arith.constant 0 : index
    %0 = vector.load %arg0[%c0, %c0_0] : memref<8x128xbf16, #tpu.memory_space<vmem>>, vector<8x128xbf16>
    %c0_1 = arith.constant 0 : index
    %c0_2 = arith.constant 0 : index
    %1 = vector.load %arg1[%c0_1, %c0_2] : memref<128x512xbf16, #tpu.memory_space<vmem>>, vector<128x512xbf16>
    %cst = arith.constant dense<0.000000e+00> : vector<8x512xf32>
    %2 = tpu.matmul %0, %1, %cst {dimension_numbers = #tpu.dot_dimension_numbers<[1], [0], [0], [1], [0, 0, 1, 1], [], []>} : vector<8x128xbf16>, vector<128x512xbf16>, vector<8x512xf32> -> vector<8x512xf32>
    %c0_3 = arith.constant 0 : index
    %c0_4 = arith.constant 0 : index
    %3 = vector.load %arg2[%c0_3, %c0_4] : memref<1x512xf32, #tpu.memory_space<vmem>>, vector<1x512xf32>
    %c0_5 = arith.constant 0 : index
    %c0_6 = arith.constant 0 : index
    %4 = vector.load %arg3[%c0_5, %c0_6] : memref<1x512xf32, #tpu.memory_space<vmem>>, vector<1x512xf32>
    %cst_7 = arith.constant dense<0.000000e+00> : vector<512xf32>
    %5 = vector.multi_reduction <add>, %2, %cst_7 [0] : vector<8x512xf32> to vector<512xf32>
    %6 = vector.shape_cast %5 : vector<512xf32> to vector<1x512xf32>
    %cst_8 = arith.constant 1.250000e-01 : f32
    %7 = vector.broadcast %cst_8 : f32 to vector<1x512xf32>
    %8 = arith.mulf %6, %7 : vector<1x512xf32>
    %9 = arith.mulf %2, %2 : vector<8x512xf32>
    %cst_9 = arith.constant dense<0.000000e+00> : vector<512xf32>
    %10 = vector.multi_reduction <add>, %9, %cst_9 [0] : vector<8x512xf32> to vector<512xf32>
    %11 = vector.shape_cast %10 : vector<512xf32> to vector<1x512xf32>
    %cst_10 = arith.constant 1.250000e-01 : f32
    %12 = vector.broadcast %cst_10 : f32 to vector<1x512xf32>
    %13 = arith.mulf %11, %12 : vector<1x512xf32>
    %14 = arith.mulf %8, %8 : vector<1x512xf32>
    %15 = arith.subf %13, %14 : vector<1x512xf32>
    %cst_11 = arith.constant 0.000000e+00 : f32
    %16 = vector.broadcast %cst_11 : f32 to vector<1x512xf32>
    %17 = arith.maximumf %15, %16 : vector<1x512xf32>
    %18 = vector.broadcast %8 : vector<1x512xf32> to vector<8x512xf32>
    %19 = arith.subf %2, %18 : vector<8x512xf32>
    %cst_12 = arith.constant 9.99999974E-6 : f32
    %20 = vector.broadcast %cst_12 : f32 to vector<1x512xf32>
    %21 = arith.addf %17, %20 : vector<1x512xf32>
    %22 = math.rsqrt %21 : vector<1x512xf32>
    %23 = vector.broadcast %22 : vector<1x512xf32> to vector<8x512xf32>
    %24 = arith.mulf %19, %23 : vector<8x512xf32>
    %25 = vector.broadcast %3 : vector<1x512xf32> to vector<8x512xf32>
    %26 = arith.mulf %24, %25 : vector<8x512xf32>
    %27 = vector.broadcast %4 : vector<1x512xf32> to vector<8x512xf32>
    %28 = arith.addf %26, %27 : vector<8x512xf32>
    %cst_13 = arith.constant 0.000000e+00 : f32
    %29 = vector.broadcast %cst_13 : f32 to vector<8x512xf32>
    %30 = arith.maximumf %28, %29 : vector<8x512xf32>
    %31 = arith.truncf %30 : vector<8x512xf32> to vector<8x512xbf16>
    %c0_14 = arith.constant 0 : index
    %c0_15 = arith.constant 0 : index
    %32 = vector.load %arg4[%c0_14, %c0_15] : memref<512x128xbf16, #tpu.memory_space<vmem>>, vector<512x128xbf16>
    %cst_16 = arith.constant dense<0.000000e+00> : vector<8x128xf32>
    %33 = tpu.matmul %31, %32, %cst_16 {dimension_numbers = #tpu.dot_dimension_numbers<[1], [0], [0], [1], [0, 0, 1, 1], [], []>} : vector<8x512xbf16>, vector<512x128xbf16>, vector<8x128xf32> -> vector<8x128xf32>
    %c0_17 = arith.constant 0 : index
    %c0_18 = arith.constant 0 : index
    %34 = vector.load %arg5[%c0_17, %c0_18] : memref<1x128xf32, #tpu.memory_space<vmem>>, vector<1x128xf32>
    %c0_19 = arith.constant 0 : index
    %c0_20 = arith.constant 0 : index
    %35 = vector.load %arg6[%c0_19, %c0_20] : memref<1x128xf32, #tpu.memory_space<vmem>>, vector<1x128xf32>
    %cst_21 = arith.constant dense<0.000000e+00> : vector<128xf32>
    %36 = vector.multi_reduction <add>, %33, %cst_21 [0] : vector<8x128xf32> to vector<128xf32>
    %37 = vector.shape_cast %36 : vector<128xf32> to vector<1x128xf32>
    %cst_22 = arith.constant 1.250000e-01 : f32
    %38 = vector.broadcast %cst_22 : f32 to vector<1x128xf32>
    %39 = arith.mulf %37, %38 : vector<1x128xf32>
    %40 = arith.mulf %33, %33 : vector<8x128xf32>
    %cst_23 = arith.constant dense<0.000000e+00> : vector<128xf32>
    %41 = vector.multi_reduction <add>, %40, %cst_23 [0] : vector<8x128xf32> to vector<128xf32>
    %42 = vector.shape_cast %41 : vector<128xf32> to vector<1x128xf32>
    %cst_24 = arith.constant 1.250000e-01 : f32
    %43 = vector.broadcast %cst_24 : f32 to vector<1x128xf32>
    %44 = arith.mulf %42, %43 : vector<1x128xf32>
    %45 = arith.mulf %39, %39 : vector<1x128xf32>
    %46 = arith.subf %44, %45 : vector<1x128xf32>
    %cst_25 = arith.constant 0.000000e+00 : f32
    %47 = vector.broadcast %cst_25 : f32 to vector<1x128xf32>
    %48 = arith.maximumf %46, %47 : vector<1x128xf32>
    %49 = vector.broadcast %39 : vector<1x128xf32> to vector<8x128xf32>
    %50 = arith.subf %33, %49 : vector<8x128xf32>
    %cst_26 = arith.constant 9.99999974E-6 : f32
    %51 = vector.broadcast %cst_26 : f32 to vector<1x128xf32>
    %52 = arith.addf %48, %51 : vector<1x128xf32>
    %53 = math.rsqrt %52 : vector<1x128xf32>
    %54 = vector.broadcast %53 : vector<1x128xf32> to vector<8x128xf32>
    %55 = arith.mulf %50, %54 : vector<8x128xf32>
    %56 = vector.broadcast %34 : vector<1x128xf32> to vector<8x128xf32>
    %57 = arith.mulf %55, %56 : vector<8x128xf32>
    %58 = vector.broadcast %35 : vector<1x128xf32> to vector<8x128xf32>
    %59 = arith.addf %57, %58 : vector<8x128xf32>
    %cst_27 = arith.constant 0.000000e+00 : f32
    %60 = vector.broadcast %cst_27 : f32 to vector<8x128xf32>
    %61 = arith.maximumf %59, %60 : vector<8x128xf32>
    %62 = arith.truncf %61 : vector<8x128xf32> to vector<8x128xbf16>
    %c0_28 = arith.constant 0 : index
    %c0_29 = arith.constant 0 : index
    %63 = vector.load %arg7[%c0_28, %c0_29] : memref<128x128xbf16, #tpu.memory_space<vmem>>, vector<128x128xbf16>
    %cst_30 = arith.constant dense<0.000000e+00> : vector<8x128xf32>
    %64 = tpu.matmul %62, %63, %cst_30 {dimension_numbers = #tpu.dot_dimension_numbers<[1], [0], [0], [1], [0, 0, 1, 1], [], []>} : vector<8x128xbf16>, vector<128x128xbf16>, vector<8x128xf32> -> vector<8x128xf32>
    %c0_31 = arith.constant 0 : index
    %c0_32 = arith.constant 0 : index
    %65 = vector.load %arg8[%c0_31, %c0_32] : memref<1x128xf32, #tpu.memory_space<vmem>>, vector<1x128xf32>
    %c0_33 = arith.constant 0 : index
    %c0_34 = arith.constant 0 : index
    %66 = vector.load %arg9[%c0_33, %c0_34] : memref<1x128xf32, #tpu.memory_space<vmem>>, vector<1x128xf32>
    %cst_35 = arith.constant dense<0.000000e+00> : vector<128xf32>
    %67 = vector.multi_reduction <add>, %64, %cst_35 [0] : vector<8x128xf32> to vector<128xf32>
    %68 = vector.shape_cast %67 : vector<128xf32> to vector<1x128xf32>
    %cst_36 = arith.constant 1.250000e-01 : f32
    %69 = vector.broadcast %cst_36 : f32 to vector<1x128xf32>
    %70 = arith.mulf %68, %69 : vector<1x128xf32>
    %71 = arith.mulf %64, %64 : vector<8x128xf32>
    %cst_37 = arith.constant dense<0.000000e+00> : vector<128xf32>
    %72 = vector.multi_reduction <add>, %71, %cst_37 [0] : vector<8x128xf32> to vector<128xf32>
    %73 = vector.shape_cast %72 : vector<128xf32> to vector<1x128xf32>
    %cst_38 = arith.constant 1.250000e-01 : f32
    %74 = vector.broadcast %cst_38 : f32 to vector<1x128xf32>
    %75 = arith.mulf %73, %74 : vector<1x128xf32>
    %76 = arith.mulf %70, %70 : vector<1x128xf32>
    %77 = arith.subf %75, %76 : vector<1x128xf32>
    %cst_39 = arith.constant 0.000000e+00 : f32
    %78 = vector.broadcast %cst_39 : f32 to vector<1x128xf32>
    %79 = arith.maximumf %77, %78 : vector<1x128xf32>
    %80 = vector.broadcast %70 : vector<1x128xf32> to vector<8x128xf32>
    %81 = arith.subf %64, %80 : vector<8x128xf32>
    %cst_40 = arith.constant 9.99999974E-6 : f32
    %82 = vector.broadcast %cst_40 : f32 to vector<1x128xf32>
    %83 = arith.addf %79, %82 : vector<1x128xf32>
    %84 = math.rsqrt %83 : vector<1x128xf32>
    %85 = vector.broadcast %84 : vector<1x128xf32> to vector<8x128xf32>
    %86 = arith.mulf %81, %85 : vector<8x128xf32>
    %87 = vector.broadcast %65 : vector<1x128xf32> to vector<8x128xf32>
    %88 = arith.mulf %86, %87 : vector<8x128xf32>
    %89 = vector.broadcast %66 : vector<1x128xf32> to vector<8x128xf32>
    %90 = arith.addf %88, %89 : vector<8x128xf32>
    %cst_41 = arith.constant 0.000000e+00 : f32
    %91 = vector.broadcast %cst_41 : f32 to vector<8x128xf32>
    %92 = arith.maximumf %90, %91 : vector<8x128xf32>
    %93 = arith.truncf %92 : vector<8x128xf32> to vector<8x128xbf16>
    %c0_42 = arith.constant 0 : index
    %c0_43 = arith.constant 0 : index
    %94 = vector.load %arg10[%c0_42, %c0_43] : memref<128x128xbf16, #tpu.memory_space<vmem>>, vector<128x128xbf16>
    %cst_44 = arith.constant dense<0.000000e+00> : vector<8x128xf32>
    %95 = tpu.matmul %93, %94, %cst_44 {dimension_numbers = #tpu.dot_dimension_numbers<[1], [0], [0], [1], [0, 0, 1, 1], [], []>} : vector<8x128xbf16>, vector<128x128xbf16>, vector<8x128xf32> -> vector<8x128xf32>
    %c0_45 = arith.constant 0 : index
    %c0_46 = arith.constant 0 : index
    %96 = vector.load %arg11[%c0_45, %c0_46] : memref<1x128xf32, #tpu.memory_space<vmem>>, vector<1x128xf32>
    %97 = vector.broadcast %96 : vector<1x128xf32> to vector<8x128xf32>
    %98 = arith.addf %95, %97 : vector<8x128xf32>
    %c0_47 = arith.constant 0 : index
    %c0_48 = arith.constant 0 : index
    %99 = vector.load %arg12[%c0_47, %c0_48] : memref<8x128xf32, #tpu.memory_space<vmem>>, vector<8x128xf32>
    tpu.vector_store %arg12[%c0_47, %c0_48], %98 {strides = array<i32>} : memref<8x128xf32, #tpu.memory_space<vmem>>, vector<8x128xf32>,
    return
  }
}

</mosaic_0001>

<bundles_post_ra>
// kernel: tpu_custom_call.1
= control target key start
LH: loop header
LB: loop body
LE: loop exit
PB: predicated region body
PF: predicated region fallthrough
CT: control target
= control target key end

     0   :  { %17 = vsyncpa [#allocation3], 0  ;;  %s1855_s0 = inlined_call_operand.hbm [shape: bf16[8,128], index: 0, kind: input, shape index: {}]   ;;  %s1856_s1 = inlined_call_operand.hbm [shape: bf16[128,512], index: 1, kind: input, shape index: {}]   ;;  %s1857_s2 = inlined_call_operand.vmem [shape: f32[1,512], index: 2, kind: input, shape index: {}]   ;;  %s1858_s3 = inlined_call_operand.vmem [shape: f32[1,512], index: 3, kind: input, shape index: {}]   ;;  %s1859_s4 = inlined_call_operand.hbm [shape: bf16[512,128], index: 4, kind: input, shape index: {}]   ;;  %s1860_s5 = inlined_call_operand.vmem [shape: f32[1,128], index: 5, kind: input, shape index: {}]   ;;  %s1861_s6 = inlined_call_operand.vmem [shape: f32[1,128], index: 6, kind: input, shape index: {}]   ;;  %s1862_s7 = inlined_call_operand.hbm [shape: bf16[128,128], index: 7, kind: input, shape index: {}]   ;;  %s1863_s8 = inlined_call_operand.vmem [shape: f32[1,128], index: 8, kind: input, shape index: {}]   ;;  %s1864_s9 = inlined_call_operand.vmem [shape: f32[1,128], index: 9, kind: input, shape index: {}]   ;;  %s1865_s10 = inlined_call_operand.hbm [shape: bf16[128,128], index: 10, kind: input, shape index: {}]   ;;  %s1866_s11 = inlined_call_operand.vmem [shape: f32[1,128], index: 11, kind: input, shape index: {}]   ;;  %s1867_s12 = inlined_call_operand.hbm [shape: f32[8,128], index: 12, kind: output, shape index: {}]  }
   0x1   :  { %18 = vsyncpa [#allocation6], 0 }
   0x2   :  { %19 = vsyncpa [#allocation9], 0 }
   0x3   :  { %20 = vsyncpa [#allocation4], 0  ;;  %s1629_s21 = smov [#allocation5]   ;;  %s1489_s25 = scalar_lea.hbm %s1856_s1, 4096 }
   0x4   :  { %s36_s22 = sshll.u32 %s1629_s21, 4  ;;  %p1490_p0 = scmp.ne.s32.totalorder %s1856_s1, %s1489_s25  ;;  %s37_s22 = int_to_ptr.vmem [resolvable:$true] %s36_s22 }
   0x5   :  { %p1493_p1 = scmp.lt.u32.totalorder %s1489_s25, %s1856_s1 }
   0x7   :  { %p1495_p2 = pnand %p1493_p1, %p1490_p0 }
   0x9   :  { %1498 = shalt.err (!%p1495_p2)
}
   0xa   :  { %s1499_s30 = scalar_lea.vmem %s37_s22, 4096  ;;  %p1504_p4 = scmp.lt.s32.totalorder %s37_s22, %s37_s22 }
   0xb   :  { %p1500_p3 = scmp.ne.s32.totalorder %s37_s22, %s1499_s30  ;;  %p1505_p5 = scmp.lt.s32.totalorder %s1499_s30, %s1499_s30 }
   0xd   :  { %p1506_p6 = por %p1505_p5, %p1504_p4 }
   0xf   :  { %p1507_p7 = pnand %p1506_p6, %p1500_p3 }
  0x11   :  { %1510 = shalt.err (!%p1507_p7)
}
  0x12   :  { %s1630_s13 = smov 256   ;;  %s1631_s14 = smov 16  }
  0x13   :  { %42 = dma.hbm_to_vmem [thread:$0]  %s1856_s1, 4096, %s37_s22, [#allocation6], %s1630_s13, %s1630_s13, %s1631_s14  }
  0x14   :  { %s1632_s17 = smov [#allocation8]   ;;  %s1633_s19 = smov [#allocation2]  }
  0x15   :  { %s68_s18 = sshll.u32 %s1632_s17, 4  ;;  %s27_s20 = sshll.u32 %s1633_s19, 4  ;;  %s69_s18 = int_to_ptr.vmem [resolvable:$true] %s68_s18  ;;  %s28_s20 = int_to_ptr.vmem [resolvable:$true] %s27_s20 }
  0x16   :  { %s1511_s24 = scalar_lea.hbm %s1862_s7, 1024 }
  0x17   :  { %p1512_p8 = scmp.ne.s32.totalorder %s1862_s7, %s1511_s24  ;;  %p1515_p9 = scmp.lt.u32.totalorder %s1511_s24, %s1862_s7 }
  0x19   :  { %p1517_p10 = pnand %p1515_p9, %p1512_p8 }
  0x1b   :  { %1520 = shalt.err (!%p1517_p10)
}
  0x1c   :  { %s1521_s1 = scalar_lea.vmem %s69_s18, 1024  ;;  %p1526_p12 = scmp.lt.s32.totalorder %s69_s18, %s69_s18 }
  0x1d   :  { %p1522_p11 = scmp.ne.s32.totalorder %s69_s18, %s1521_s1  ;;  %p1527_p13 = scmp.lt.s32.totalorder %s1521_s1, %s1521_s1 }
  0x1f   :  { %p1528_p0 = por %p1527_p13, %p1526_p12 }
  0x21   :  { %p1529_p1 = pnand %p1528_p0, %p1522_p11 }
  0x23   :  { %1532 = shalt.err (!%p1529_p1)
}
  0x24   :  { %s1634_s22 = smov 64   ;;  %s1635_s29 = smov 4  }
  0x25   :  { %74 = dma.hbm_to_vmem [thread:$0]  %s1862_s7, 1024, %s69_s18, [#allocation9], %s1634_s22, %s1634_s22, %s1635_s29  }
  0x26   :  { %s1533_s16 = scalar_lea.hbm %s1855_s0, 64 }
  0x27   :  { %p1534_p2 = scmp.ne.s32.totalorder %s1855_s0, %s1533_s16  ;;  %p1537_p3 = scmp.lt.u32.totalorder %s1533_s16, %s1855_s0 }
  0x29   :  { %p1539_p4 = pnand %p1537_p3, %p1534_p2 }
  0x2b   :  { %1542 = shalt.err (!%p1539_p4)
}
  0x2c   :  { %s1543_s24 = scalar_lea.vmem %s28_s20, 64  ;;  %p1548_p6 = scmp.lt.s32.totalorder %s28_s20, %s28_s20 }
  0x2d   :  { %p1544_p5 = scmp.ne.s32.totalorder %s28_s20, %s1543_s24  ;;  %p1549_p7 = scmp.lt.s32.totalorder %s1543_s24, %s1543_s24 }
  0x2f   :  { %p1550_p8 = por %p1549_p7, %p1548_p6 }
  0x31   :  { %p1551_p9 = pnand %p1550_p8, %p1544_p5 }
  0x33   :  { %1554 = shalt.err (!%p1551_p9)
}
  0x34   :  { %30 = dma.hbm_to_vmem [thread:$0]  %s1855_s0, 64, %s28_s20, [#allocation3]  }
  0x35   :  { %s1636_s25 = smov [#allocation7]   ;;  %s1637_s27 = smov [#allocation10]  }
  0x36   :  { %s52_s26 = sshll.u32 %s1636_s25, 4  ;;  %s84_s28 = sshll.u32 %s1637_s27, 4  ;;  %s53_s26 = int_to_ptr.vmem [resolvable:$true] %s52_s26  ;;  %s85_s28 = int_to_ptr.vmem [resolvable:$true] %s84_s28 }
  0x37   :  { %s1555_s13 = scalar_lea.hbm %s1859_s4, 4096 }
  0x38   :  { %p1556_p10 = scmp.ne.s32.totalorder %s1859_s4, %s1555_s13  ;;  %p1559_p11 = scmp.lt.u32.totalorder %s1555_s13, %s1859_s4 }
  0x3a   :  { %p1561_p12 = pnand %p1559_p11, %p1556_p10 }
  0x3c   :  { %1564 = shalt.err (!%p1561_p12)
}
  0x3d   :  { %s1565_s0 = scalar_lea.vmem %s53_s26, 4096  ;;  %p1570_p0 = scmp.lt.s32.totalorder %s53_s26, %s53_s26 }
  0x3e   :  { %p1566_p13 = scmp.ne.s32.totalorder %s53_s26, %s1565_s0  ;;  %p1571_p1 = scmp.lt.s32.totalorder %s1565_s0, %s1565_s0 }
  0x40   :  { %p1572_p2 = por %p1571_p1, %p1570_p0 }
  0x42   :  { %p1573_p3 = pnand %p1572_p2, %p1566_p13 }
  0x44   :  { %1576 = shalt.err (!%p1573_p3)
}
  0x45   :  { %58 = dma.hbm_to_vmem [thread:$0]  %s1859_s4, 4096, %s53_s26, [#allocation6], %s1634_s22, %s1634_s22, %s1635_s29  }
  0x46   :  { %s1577_s24 = scalar_lea.hbm %s1865_s10, 1024 }
  0x47   :  { %p1578_p4 = scmp.ne.s32.totalorder %s1865_s10, %s1577_s24  ;;  %p1581_p5 = scmp.lt.u32.totalorder %s1577_s24, %s1865_s10 }
  0x49   :  { %p1583_p6 = pnand %p1581_p5, %p1578_p4 }
  0x4b   :  { %1586 = shalt.err (!%p1583_p6)
}
  0x4c   :  { %s1587_s1 = scalar_lea.vmem %s85_s28, 1024  ;;  %p1592_p8 = scmp.lt.s32.totalorder %s85_s28, %s85_s28 }
  0x4d   :  { %p1588_p7 = scmp.ne.s32.totalorder %s85_s28, %s1587_s1  ;;  %p1593_p9 = scmp.lt.s32.totalorder %s1587_s1, %s1587_s1 }
  0x4f   :  { %p1594_p10 = por %p1593_p9, %p1592_p8 }
  0x51   :  { %p1595_p11 = pnand %p1594_p10, %p1588_p7 }
  0x53   :  { %1598 = shalt.err (!%p1595_p11)
}
  0x54   :  { %90 = dma.hbm_to_vmem [thread:$0]  %s1865_s10, 1024, %s85_s28, [#allocation9], %s1634_s22, %s1634_s22, %s1635_s29  }
  0x55   :  { %1621 = dma.done.wait [#allocation3], 64  }
  0x56   :  { %1622 = vsyncadd [#allocation3], 4294967232 }
  0x57   :  { %1623 = dma.done.wait [#allocation6], 8192  }
  0x58   :  { %1624 = vsyncadd [#allocation6], 4294959104 }
  0x59   :  { %1625 = dma.done.wait [#allocation9], 2048  }
  0x5a   :  { %1626 = vsyncadd [#allocation9], 4294965248  ;;  %v1638_v0 = vmov 0   ;;  %v1381_v1 = vld [vmem:[#allocation5 + $0x4] ss:$16 sps:$4 sm:$0xff]   ;;  %v1433_v38 = vld [vmem:[#allocation7 + $0x48] sm:$0xff]  }
  0x5b   :  { %334 = vmatprep.mubr.bf16.mxu0 %v1638_v0  ;;  %375 = vmatprep.mubr.bf16.mxu1 %v1638_v0  ;;  %v1383_v2 = vld [vmem:[#allocation5 + $0xc] ss:$16 sps:$4 sm:$0xff]   ;;  %v1385_v3 = vld [vmem:[#allocation5] ss:$16 sps:$4 sm:$0xff]   ;;  %v1386_v4 = vld [vmem:[#allocation5 + $0x8] ss:$16 sps:$4 sm:$0xff]  }
  0x5c   :  { %302 = vmatprep.subr.bf16.mxu0 %v1381_v1  ;;  %343 = vmatprep.subr.bf16.mxu1 %v1383_v2  ;;  %v1387_v5 = vld [vmem:[#allocation5 + $0x24] ss:$16 sps:$4 sm:$0xff]   ;;  %v1389_v6 = vld [vmem:[#allocation5 + $0x2c] ss:$16 sps:$4 sm:$0xff]   ;;  %v1391_v7 = vld [vmem:[#allocation5 + $0x20] ss:$16 sps:$4 sm:$0xff]  }
  0x5d   :  { %303 = vmatpush1.bf16.msra.mxu0 %v1385_v3  ;;  %344 = vmatpush1.bf16.msra.mxu1 %v1386_v4  ;;  %v1392_v8 = vld [vmem:[#allocation5 + $0x28] ss:$16 sps:$4 sm:$0xff]   ;;  %v1393_v9 = vld [vmem:[#allocation5 + $0x44] ss:$16 sps:$4 sm:$0xff]   ;;  %v1395_v10 = vld [vmem:[#allocation5 + $0x4c] ss:$16 sps:$4 sm:$0xff]  }
  0x5e   :  { %304 = vmatprep.subr.bf16.mxu0 %v1387_v5  ;;  %345 = vmatprep.subr.bf16.mxu1 %v1389_v6  ;;  %v1397_v11 = vld [vmem:[#allocation5 + $0x40] ss:$16 sps:$4 sm:$0xff]   ;;  %v1398_v12 = vld [vmem:[#allocation5 + $0x48] ss:$16 sps:$4 sm:$0xff]   ;;  %v1399_v13 = vld [vmem:[#allocation5 + $0x64] ss:$16 sps:$4 sm:$0xff]  }
  0x5f   :  { %v1401_v14 = vld [vmem:[#allocation5 + $0x6c] ss:$16 sps:$4 sm:$0xff]   ;;  %v1403_v15 = vld [vmem:[#allocation5 + $0x60] ss:$16 sps:$4 sm:$0xff]   ;;  %v1404_v16 = vld [vmem:[#allocation5 + $0x68] ss:$16 sps:$4 sm:$0xff]  }
  0x60   :  { %v1405_v17 = vld [vmem:[#allocation5 + $0x84] ss:$16 sps:$4 sm:$0xff]   ;;  %v1407_v18 = vld [vmem:[#allocation5 + $0x8c] ss:$16 sps:$4 sm:$0xff]   ;;  %v1409_v19 = vld [vmem:[#allocation5 + $0x80] ss:$16 sps:$4 sm:$0xff]  }
  0x61   :  { %305 = vmatpush1.bf16.msra.mxu0 %v1391_v7  ;;  %346 = vmatpush1.bf16.msra.mxu1 %v1392_v8  ;;  %v1410_v20 = vld [vmem:[#allocation5 + $0x88] ss:$16 sps:$4 sm:$0xff]   ;;  %v1411_v21 = vld [vmem:[#allocation5 + $0xa4] ss:$16 sps:$4 sm:$0xff]   ;;  %v1413_v22 = vld [vmem:[#allocation5 + $0xac] ss:$16 sps:$4 sm:$0xff]  }
  0x62   :  { %306 = vmatprep.subr.bf16.mxu0 %v1393_v9  ;;  %347 = vmatprep.subr.bf16.mxu1 %v1395_v10  ;;  %v1415_v23 = vld [vmem:[#allocation5 + $0xa0] ss:$16 sps:$4 sm:$0xff]   ;;  %v1416_v24 = vld [vmem:[#allocation5 + $0xa8] ss:$16 sps:$4 sm:$0xff]   ;;  %v1417_v25 = vld [vmem:[#allocation5 + $0xc4] ss:$16 sps:$4 sm:$0xff]  }
  0x63   :  { %v1419_v26 = vld [vmem:[#allocation5 + $0xcc] ss:$16 sps:$4 sm:$0xff]   ;;  %v1421_v27 = vld [vmem:[#allocation5 + $0xc0] ss:$16 sps:$4 sm:$0xff]   ;;  %v1422_v28 = vld [vmem:[#allocation5 + $0xc8] ss:$16 sps:$4 sm:$0xff]  }
  0x64   :  { %v1423_v29 = vld [vmem:[#allocation5 + $0xe4] ss:$16 sps:$4 sm:$0xff]   ;;  %v1425_v30 = vld [vmem:[#allocation5 + $0xec] ss:$16 sps:$4 sm:$0xff]   ;;  %v1427_v31 = vld [vmem:[#allocation5 + $0xe0] ss:$16 sps:$4 sm:$0xff]  }
  0x65   :  { %307 = vmatpush1.bf16.msra.mxu0 %v1397_v11  ;;  %348 = vmatpush1.bf16.msra.mxu1 %v1398_v12  ;;  %v1428_v32 = vld [vmem:[#allocation5 + $0xe8] ss:$16 sps:$4 sm:$0xff]   ;;  %v109_v33 = vld [vmem:[#allocation2] sm:$0xf]  ;;  %v1429_v34 = vld [vmem:[#allocation7 + $0x40] sm:$0xff]   ;;  %vm1640_vm0 = vmmov 0  }
  0x66   :  { %308 = vmatprep.subr.bf16.mxu0 %v1399_v13  ;;  %349 = vmatprep.subr.bf16.mxu1 %v1401_v14  ;;  %v1430_v35 = vld [vmem:[#allocation7 + $0xc0] sm:$0xff]   ;;  %v1434_v39 = vld [vmem:[#allocation7 + $0xc8] sm:$0xff]   ;;  %v1437_v42 = vld [vmem:[#allocation7 + $0x50] sm:$0xff]   ;;  %s1641_s0 = smov [#allocation11]  }
  0x67   :  { %v1431_v36 = vld [vmem:[#allocation7] sm:$0xff]   ;;  %v1435_v40 = vld [vmem:[#allocation7 + $0x8] sm:$0xff]   ;;  %v1438_v43 = vld [vmem:[#allocation7 + $0xd0] sm:$0xff]   ;;  %s1170_s20 = sshll.u32 %s1641_s0, 4  ;;  %s1171_s20 = int_to_ptr.vmem [resolvable:$true] %s1170_s20 }
  0x68   :  { %v1432_v37 = vld [vmem:[#allocation7 + $0x80] sm:$0xff]   ;;  %v1436_v41 = vld [vmem:[#allocation7 + $0x88] sm:$0xff]   ;;  %v1439_v44 = vld [vmem:[#allocation7 + $0x10] sm:$0xff]   ;;  %p1604_p13 = scmp.lt.s32.totalorder %s1171_s20, %s1171_s20 }
  0x69   :  { %309 = vmatpush1.bf16.msra.mxu0 %v1403_v15  ;;  %350 = vmatpush1.bf16.msra.mxu1 %v1404_v16  ;;  %v1440_v45 = vld [vmem:[#allocation7 + $0x90] sm:$0xff]   ;;  %v1441_v46 = vld [vmem:[#allocation7 + $0x58] sm:$0xff]   ;;  %v1445_v50 = vld [vmem:[#allocation7 + $0x60] sm:$0xff]  }
  0x6a   :  { %310 = vmatprep.subr.bf16.mxu0 %v1405_v17  ;;  %351 = vmatprep.subr.bf16.mxu1 %v1407_v18  ;;  %v1442_v47 = vld [vmem:[#allocation7 + $0xd8] sm:$0xff]   ;;  %v1446_v51 = vld [vmem:[#allocation7 + $0xe0] sm:$0xff]   ;;  %v1449_v54 = vld [vmem:[#allocation7 + $0x68] sm:$0xff]  }
  0x6b   :  { %v1443_v48 = vld [vmem:[#allocation7 + $0x18] sm:$0xff]   ;;  %v1447_v52 = vld [vmem:[#allocation7 + $0x20] sm:$0xff]   ;;  %v1450_v55 = vld [vmem:[#allocation7 + $0xe8] sm:$0xff]  }
  0x6c   :  { %v1444_v49 = vld [vmem:[#allocation7 + $0x98] sm:$0xff]   ;;  %v1448_v53 = vld [vmem:[#allocation7 + $0xa0] sm:$0xff]   ;;  %v1451_v56 = vld [vmem:[#allocation7 + $0x28] sm:$0xff]  }
  0x6d   :  { %311 = vmatpush1.bf16.msra.mxu0 %v1409_v19  ;;  %352 = vmatpush1.bf16.msra.mxu1 %v1410_v20  ;;  %v1452_v57 = vld [vmem:[#allocation7 + $0xa8] sm:$0xff]   ;;  %v1453_v58 = vld [vmem:[#allocation7 + $0x70] sm:$0xff]   ;;  %v1457_v62 = vld [vmem:[#allocation7 + $0x78] sm:$0xff]  }
  0x6e   :  { %312 = vmatprep.subr.bf16.mxu0 %v1411_v21  ;;  %353 = vmatprep.subr.bf16.mxu1 %v1413_v22  ;;  %v1454_v59 = vld [vmem:[#allocation7 + $0xf0] sm:$0xff]   ;;  %v1458_v63 = vld [vmem:[#allocation7 + $0xf8] sm:$0xff]  }
  0x6f   :  { %v1455_v60 = vld [vmem:[#allocation7 + $0x30] sm:$0xff]   ;;  %v1459_v0 = vld [vmem:[#allocation7 + $0x38] sm:$0xff]  }
  0x70   :  { %v1456_v61 = vld [vmem:[#allocation7 + $0xb0] sm:$0xff]   ;;  %v1460_v1 = vld [vmem:[#allocation7 + $0xb8] sm:$0xff]  }
  0x71   :  { %313 = vmatpush1.bf16.msra.mxu0 %v1415_v23  ;;  %354 = vmatpush1.bf16.msra.mxu1 %v1416_v24 }
  0x72   :  { %314 = vmatprep.subr.bf16.mxu0 %v1417_v25  ;;  %355 = vmatprep.subr.bf16.mxu1 %v1419_v26 }
  0x75   :  { %315 = vmatpush1.bf16.msra.mxu0 %v1421_v27  ;;  %356 = vmatpush1.bf16.msra.mxu1 %v1422_v28 }
  0x76   :  { %316 = vmatprep.subr.bf16.mxu0 %v1423_v29  ;;  %357 = vmatprep.subr.bf16.mxu1 %v1425_v30 }
  0x79   :  { %317 = vmatpush1.bf16.msra.mxu0 %v1427_v31  ;;  %358 = vmatpush1.bf16.msra.mxu1 %v1428_v32 }
  0x7a   :  { %1266 = vmatprep.subr.bf16.mxu0 %v1429_v34  ;;  %1288 = vmatprep.subr.bf16.mxu1 %v1430_v35 }
  0x7c   :  { %335 = vmatmul.mubr.bf16.vlgmr.msra.gmra.mrb[0].mxu0 %v109_v33  ;;  %376 = vmatmul.mubr.bf16.vlgmr.msra.gmra.mrb[0].mxu1 %v109_v33 }
  0x7d   :  { %1267 = vmatpush3.bf16.msra.mxu0 %v1431_v36  ;;  %1289 = vmatpush3.bf16.msra.mxu1 %v1432_v37 }
  0x7e   :  { %1268 = vmatprep.subr.bf16.mxu0 %v1433_v38  ;;  %1290 = vmatprep.subr.bf16.mxu1 %v1434_v39 }
  0x81   :  { %1269 = vmatpush3.bf16.msra.mxu0 %v1435_v40  ;;  %1291 = vmatpush3.bf16.msra.mxu1 %v1436_v41 }
  0x82   :  { %1270 = vmatprep.subr.bf16.mxu0 %v1437_v42  ;;  %1292 = vmatprep.subr.bf16.mxu1 %v1438_v43 }
  0x85   :  { %1271 = vmatpush3.bf16.msra.mxu0 %v1439_v44  ;;  %1293 = vmatpush3.bf16.msra.mxu1 %v1440_v45 }
  0x86   :  { %1272 = vmatprep.subr.bf16.mxu0 %v1441_v46  ;;  %1294 = vmatprep.subr.bf16.mxu1 %v1442_v47 }
  0x89   :  { %1273 = vmatpush3.bf16.msra.mxu0 %v1443_v48  ;;  %1295 = vmatpush3.bf16.msra.mxu1 %v1444_v49 }
  0x8a   :  { %1274 = vmatprep.subr.bf16.mxu0 %v1445_v50  ;;  %1296 = vmatprep.subr.bf16.mxu1 %v1446_v51 }
  0x8d   :  { %1275 = vmatpush3.bf16.msra.mxu0 %v1447_v52  ;;  %1297 = vmatpush3.bf16.msra.mxu1 %v1448_v53 }
  0x8e   :  { %1276 = vmatprep.subr.bf16.mxu0 %v1449_v54  ;;  %1298 = vmatprep.subr.bf16.mxu1 %v1450_v55 }
  0x91   :  { %1277 = vmatpush3.bf16.msra.mxu0 %v1451_v56  ;;  %1299 = vmatpush3.bf16.msra.mxu1 %v1452_v57 }
  0x92   :  { %1278 = vmatprep.subr.bf16.mxu0 %v1453_v58  ;;  %1300 = vmatprep.subr.bf16.mxu1 %v1454_v59 }
  0x95   :  { %1279 = vmatpush3.bf16.msra.mxu0 %v1455_v60  ;;  %1301 = vmatpush3.bf16.msra.mxu1 %v1456_v61 }
  0x96   :  { %1280 = vmatprep.subr.bf16.mxu0 %v1457_v62  ;;  %1302 = vmatprep.subr.bf16.mxu1 %v1458_v63 }
  0x99   :  { %1281 = vmatpush3.bf16.msra.mxu0 %v1459_v0  ;;  %1303 = vmatpush3.bf16.msra.mxu1 %v1460_v1 }
 0x14f   :  { %v1776_v2 = vpop.f32.mrb[0].mxu0  ;;  %v1778_v3 = vpop.f32.mrb[0].mxu1 }
 0x150   :  { %v386_v4 = vrot.slane %v1776_v2, 4  ;;  %v414_v5 = vmul.f32 %v1776_v2, %v1776_v2  ;;  %v398_v6 = vrot.slane %v1778_v3, 4  ;;  %v416_v7 = vmul.f32 %v1778_v3, %v1778_v3  ;;  %v1786_v8 = vpop.f32.mrb[1].mxu0  ;;  %v1788_v9 = vpop.f32.mrb[1].mxu1 }
 0x151   :  { %v392_v10 = vrot.slane %v1786_v8, 4  ;;  %v415_v11 = vmul.f32 %v1786_v8, %v1786_v8  ;;  %v404_v12 = vrot.slane %v1788_v9, 4  ;;  %v417_v13 = vmul.f32 %v1788_v9, %v1788_v9  ;;  %v340_v14 = vpop.f32.mrb[2].mxu0  ;;  %v381_v15 = vpop.f32.mrb[2].mxu1 }
 0x152   :  { %v387_v16 = vadd.f32 %v386_v4, %v1776_v2  ;;  %v418_v17 = vrot.slane %v414_v5, 4  ;;  %v399_v18 = vadd.f32 %v398_v6, %v1778_v3  ;;  %v430_v19 = vrot.slane %v416_v7, 4  ;;  %v341_v20 = vpop.f32.mrb[3].mxu0  ;;  %v382_v21 = vpop.f32.mrb[3].mxu1 }
 0x153   :  { %v393_v22 = vadd.f32 %v392_v10, %v1786_v8  ;;  %v424_v23 = vrot.slane %v415_v11, 4  ;;  %v405_v24 = vadd.f32 %v404_v12, %v1788_v9  ;;  %v436_v25 = vrot.slane %v417_v13, 4 }
 0x154   :  { %v388_v26 = vrot.slane %v387_v16, 2  ;;  %v419_v27 = vadd.f32 %v418_v17, %v414_v5  ;;  %v400_v28 = vrot.slane %v399_v18, 2  ;;  %v431_v29 = vadd.f32 %v430_v19, %v416_v7 }
 0x155   :  { %v394_v30 = vrot.slane %v393_v22, 2  ;;  %v425_v31 = vadd.f32 %v424_v23, %v415_v11  ;;  %v406_v32 = vrot.slane %v405_v24, 2  ;;  %v437_v33 = vadd.f32 %v436_v25, %v417_v13 }
 0x156   :  { %v389_v34 = vadd.f32 %v388_v26, %v387_v16  ;;  %v420_v35 = vrot.slane %v419_v27, 2  ;;  %v401_v36 = vadd.f32 %v400_v28, %v399_v18  ;;  %v432_v37 = vrot.slane %v431_v29, 2 }
 0x157   :  { %v395_v38 = vadd.f32 %v394_v30, %v393_v22  ;;  %v426_v39 = vrot.slane %v425_v31, 2  ;;  %v407_v40 = vadd.f32 %v406_v32, %v405_v24  ;;  %v438_v41 = vrot.slane %v437_v33, 2  ;;  %v385_v32 = vld [vmem:[%s1858_s3] sm:$0xf] }
 0x158   :  { %v390_v42 = vrot.slane %v389_v34, 1  ;;  %v421_v43 = vadd.f32 %v420_v35, %v419_v27  ;;  %v402_v44 = vrot.slane %v401_v36, 1  ;;  %v433_v45 = vadd.f32 %v432_v37, %v431_v29  ;;  %v384_v29 = vld [vmem:[%s1857_s2] sm:$0xf] }
 0x159   :  { %v396_v46 = vrot.slane %v395_v38, 1  ;;  %v427_v47 = vadd.f32 %v426_v39, %v425_v31  ;;  %v408_v48 = vrot.slane %v407_v40, 1  ;;  %v439_v49 = vadd.f32 %v438_v41, %v437_v33 }
 0x15a   :  { %v391_v50 = vadd.f32 %v390_v42, %v389_v34  ;;  %v422_v51 = vrot.slane %v421_v43, 1  ;;  %v403_v52 = vadd.f32 %v402_v44, %v401_v36  ;;  %v434_v53 = vrot.slane %v433_v45, 1 }
 0x15b   :  { %v397_v54 = vadd.f32 %v396_v46, %v395_v38  ;;  %v428_v55 = vrot.slane %v427_v47, 1  ;;  %v409_v56 = vadd.f32 %v408_v48, %v407_v40  ;;  %v440_v57 = vrot.slane %v439_v49, 1 }
 0x15c   :  { %v410_v58 = vmul.f32 0.125, %v391_v50  ;;  %v423_v59 = vadd.f32 %v422_v51, %v421_v43  ;;  %v412_v60 = vmul.f32 0.125, %v403_v52  ;;  %v435_v61 = vadd.f32 %v434_v53, %v433_v45 }
 0x15d   :  { %v411_v62 = vmul.f32 0.125, %v397_v54  ;;  %v429_v63 = vadd.f32 %v428_v55, %v427_v47  ;;  %v413_v0 = vmul.f32 0.125, %v409_v56  ;;  %v441_v1 = vadd.f32 %v440_v57, %v439_v49 }
 0x15e   :  { %v442_v4 = vmul.f32 0.125, %v423_v59  ;;  %v446_v5 = vmul.f32 %v410_v58, %v410_v58  ;;  %v444_v6 = vmul.f32 0.125, %v435_v61  ;;  %v448_v7 = vmul.f32 %v412_v60, %v412_v60 }
 0x15f   :  { %v443_v10 = vmul.f32 0.125, %v429_v63  ;;  %v447_v11 = vmul.f32 %v411_v62, %v411_v62  ;;  %v445_v13 = vmul.f32 0.125, %v441_v1  ;;  %v449_v14 = vmul.f32 %v413_v0, %v413_v0 }
 0x160   :  { %v450_v12 = vsub.f32 %v442_v4, %v446_v5  ;;  %v452_v15 = vsub.f32 %v444_v6, %v448_v7  ;;  %v475_v19 = vlaneseq  ;;  %v458_v34 = vsub.f32 %v1776_v2, %v410_v58  ;;  %v1461_v4 = vld [vmem:[#allocation8] sm:$0xff]   ;;  %v1462_v6 = vld [vmem:[#allocation8 + $0x8] sm:$0xff]   ;;  %v1463_v7 = vld [vmem:[#allocation8 + $0x10] sm:$0xff]  }
 0x161   :  { %v451_v16 = vsub.f32 %v443_v10, %v447_v11  ;;  %v453_v18 = vsub.f32 %v445_v13, %v449_v14  ;;  %v460_v37 = vsub.f32 %v1778_v3, %v412_v60  ;;  %v459_v41 = vsub.f32 %v1786_v8, %v411_v62  ;;  %v1464_v10 = vld [vmem:[#allocation8 + $0x18] sm:$0xff]   ;;  %v1465_v11 = vld [vmem:[#allocation8 + $0x20] sm:$0xff]   ;;  %v1467_v13 = vld [vmem:[#allocation8 + $0x30] sm:$0xff]  }
 0x162   :  { %v454_v17 = vmax.f32 %v450_v12, 0.0  ;;  %v456_v20 = vmax.f32 %v452_v15, 0.0  ;;  %v476_v27 = vshrl.u32 %v475_v19, 7  ;;  %v461_v46 = vsub.f32 %v1788_v9, %v413_v0  ;;  %v1466_v12 = vld [vmem:[#allocation8 + $0x28] sm:$0xff]   ;;  %v1468_v14 = vld [vmem:[#allocation8 + $0x38] sm:$0xff]  }
 0x163   :  { %v455_v21 = vmax.f32 %v451_v16, 0.0  ;;  %v457_v23 = vmax.f32 %v453_v18, 0.0  ;;  %v1639_v5 = vmov 0.0  }
 0x164   :  { %v462_v22 = vadd.f32 1e-05, %v454_v17  ;;  %v464_v24 = vadd.f32 1e-05, %v456_v20  ;;  %v477_v28 = vsub.s32 0, %v476_v27  ;;  %v485_v30 = vsub.s32 2, %v476_v27  ;;  %1328 = vmatprep.subr.bf16.mxu0 %v1639_v5  ;;  %1348 = vmatprep.subr.bf16.mxu1 %v1639_v5 }
 0x165   :  { %v463_v25 = vadd.f32 1e-05, %v455_v21  ;;  %v465_v26 = vadd.f32 1e-05, %v457_v23  ;;  %v481_v31 = vsub.s32 1, %v476_v27  ;;  %v489_v33 = vsub.s32 3, %v476_v27 }
 0x166   :  { %1477 = vrsqrt.f32 %v462_v22  ;;  %v478_v35 = vrot.slane %v384_v29, %v477_v28  ;;  %v486_v38 = vrot.slane %v384_v29, %v485_v30  ;;  %v503_v43 = vrot.slane %v385_v32, %v477_v28 }
 0x167   :  { %1479 = vrsqrt.f32 %v464_v24  ;;  %v482_v42 = vrot.slane %v384_v29, %v481_v31  ;;  %v490_v47 = vrot.slane %v384_v29, %v489_v33  ;;  %v511_v48 = vrot.slane %v385_v32, %v485_v30 }
 0x168   :  { %1481 = vrsqrt.f32 %v463_v25  ;;  %v507_v51 = vrot.slane %v385_v32, %v481_v31  ;;  %v515_v3 = vrot.slane %v385_v32, %v489_v33 }
 0x169   :  { %1483 = vrsqrt.f32 %v465_v26 }
 0x170   :  { %v1478_v36 = vpop.eup %1477 }
 0x171   :  { %v1480_v39 = vpop.eup %1479  ;;  %v470_v40 = vmul.f32 %v1478_v36, %v458_v34 }
 0x172   :  { %v1482_v44 = vpop.eup %1481  ;;  %v472_v45 = vmul.f32 %v1480_v39, %v460_v37 }
 0x173   :  { %v1484_v49 = vpop.eup %1483  ;;  %v495_v50 = vmul.f32 %v478_v35, %v470_v40  ;;  %v471_v2 = vmul.f32 %v1482_v44, %v459_v41 }
 0x174   :  { %v497_v52 = vmul.f32 %v486_v38, %v472_v45  ;;  %v473_v53 = vmul.f32 %v1484_v49, %v461_v46  ;;  %v1246_v49 = vld [vmem:[%s1861_s6] ss:$0 sm:$0xff] }
 0x175   :  { %v496_v54 = vmul.f32 %v482_v42, %v471_v2  ;;  %v520_v55 = vadd.f32 %v503_v43, %v495_v50 }
 0x176   :  { %v498_v56 = vmul.f32 %v490_v47, %v473_v53  ;;  %v522_v57 = vadd.f32 %v511_v48, %v497_v52  ;;  %v1245_v47 = vld [vmem:[%s1860_s5] ss:$0 sm:$0xff]  ;;  %v1469_v53 = vld [vmem:[#allocation10] sm:$0xff]  }
 0x177   :  { %v521_v8 = vadd.f32 %v507_v51, %v496_v54  ;;  %v524_v59 = vmax.f32 %v520_v55, 0.0  ;;  %v1471_v54 = vld [vmem:[#allocation10 + $0x10] sm:$0xff]   ;;  %v1472_v55 = vld [vmem:[#allocation10 + $0x18] sm:$0xff]  }
 0x178   :  { %v523_v58 = vadd.f32 %v515_v3, %v498_v56  ;;  %v526_v61 = vmax.f32 %v522_v57, 0.0  ;;  %v1470_v3 = vld [vmem:[#allocation10 + $0x8] sm:$0xff]   ;;  %v1473_v56 = vld [vmem:[#allocation10 + $0x20] sm:$0xff]  }
 0x179   :  { %v525_v60 = vmax.f32 %v521_v8, 0.0  ;;  %v528_v0 = vpack.c.bf16 %v524_v59, %v524_v59  ;;  %v1474_v57 = vld [vmem:[#allocation10 + $0x28] sm:$0xff]   ;;  %v1475_v8 = vld [vmem:[#allocation10 + $0x30] sm:$0xff]  }
 0x17a   :  { %v527_v62 = vmax.f32 %v523_v58, 0.0  ;;  %v530_v1 = vpack.c.bf16 %v526_v61, %v526_v61  ;;  %v1476_v58 = vld [vmem:[#allocation10 + $0x38] sm:$0xff]  }
 0x17b   :  { %v529_v9 = vpack.c.bf16 %v525_v60, %v525_v60 }
 0x17c   :  { %v531_v63 = vpack.c.bf16 %v527_v62, %v527_v62 }
 0x17d   :  { %820 = vmatprep.mubr.bf16.mxu0 %v529_v9 }
 0x17e   :  { %860 = vmatprep.mubr.bf16.mxu1 %v531_v63  ;;  %821 = vmatmul.mubr.bf16.vlgmr.msra.gmra.mrb[4].mxu0 %v528_v0 }
 0x17f   :  { %861 = vmatmul.mubr.bf16.vlgmr.msra.gmra.mrb[4].mxu1 %v530_v1  ;;  %1329 = vmatpush3.bf16.msra.mxu0 %v1461_v4 }
 0x180   :  { %1330 = vmatprep.subr.bf16.mxu0 %v1639_v5  ;;  %1344 = vmatprep.mubr.msk.bf16.mxu0 %vm1640_vm0, %v1639_v5 }
 0x181   :  { %1364 = vmatprep.mubr.msk.bf16.mxu1 %vm1640_vm0, %v1639_v5  ;;  %1349 = vmatpush3.bf16.msra.mxu1 %v1469_v53 }
 0x182   :  { %1350 = vmatprep.subr.bf16.mxu1 %v1639_v5 }
 0x183   :  { %1331 = vmatpush3.bf16.msra.mxu0 %v1462_v6 }
 0x184   :  { %1332 = vmatprep.subr.bf16.mxu0 %v1639_v5 }
 0x185   :  { %1351 = vmatpush3.bf16.msra.mxu1 %v1470_v3 }
 0x186   :  { %1352 = vmatprep.subr.bf16.mxu1 %v1639_v5 }
 0x187   :  { %1333 = vmatpush3.bf16.msra.mxu0 %v1463_v7 }
 0x188   :  { %1334 = vmatprep.subr.bf16.mxu0 %v1639_v5 }
 0x189   :  { %1353 = vmatpush3.bf16.msra.mxu1 %v1471_v54 }
 0x18a   :  { %1354 = vmatprep.subr.bf16.mxu1 %v1639_v5 }
 0x18b   :  { %1335 = vmatpush3.bf16.msra.mxu0 %v1464_v10 }
 0x18c   :  { %1336 = vmatprep.subr.bf16.mxu0 %v1639_v5 }
 0x18d   :  { %1355 = vmatpush3.bf16.msra.mxu1 %v1472_v55 }
 0x18e   :  { %1356 = vmatprep.subr.bf16.mxu1 %v1639_v5 }
 0x18f   :  { %1337 = vmatpush3.bf16.msra.mxu0 %v1465_v11 }
 0x190   :  { %1338 = vmatprep.subr.bf16.mxu0 %v1639_v5 }
 0x191   :  { %1357 = vmatpush3.bf16.msra.mxu1 %v1473_v56 }
 0x192   :  { %1358 = vmatprep.subr.bf16.mxu1 %v1639_v5 }
 0x193   :  { %1339 = vmatpush3.bf16.msra.mxu0 %v1466_v12 }
 0x194   :  { %1340 = vmatprep.subr.bf16.mxu0 %v1639_v5 }
 0x195   :  { %1359 = vmatpush3.bf16.msra.mxu1 %v1474_v57 }
 0x196   :  { %1360 = vmatprep.subr.bf16.mxu1 %v1639_v5 }
 0x197   :  { %1341 = vmatpush3.bf16.msra.mxu0 %v1467_v13 }
 0x198   :  { %1342 = vmatprep.subr.bf16.mxu0 %v1639_v5 }
 0x199   :  { %1361 = vmatpush3.bf16.msra.mxu1 %v1475_v8 }
 0x19a   :  { %1362 = vmatprep.subr.bf16.mxu1 %v1639_v5 }
 0x19b   :  { %1343 = vmatpush3.bf16.msra.mxu0 %v1468_v14 }
 0x19d   :  { %1363 = vmatpush3.bf16.msra.mxu1 %v1476_v58 }
 0x251   :  { %v1282_v15 = vpop.f32.mrb[4].mxu0 }
 0x252   :  { %v1304_v16 = vpop.f32.mrb[4].mxu1  ;;  %v1283_v17 = vpop.f32.mrb[5].mxu0 }
 0x253   :  { %v1284_v18 = vadd.f32 %v1283_v17, %v1282_v15  ;;  %v1305_v19 = vpop.f32.mrb[5].mxu1  ;;  %v1285_v20 = vpop.f32.mrb[6].mxu0 }
 0x254   :  { %v1306_v21 = vadd.f32 %v1305_v19, %v1304_v16  ;;  %v1307_v22 = vpop.f32.mrb[6].mxu1  ;;  %v1286_v23 = vpop.f32.mrb[7].mxu0 }
 0x255   :  { %v1308_v24 = vpop.f32.mrb[7].mxu1  ;;  %v1255_v23 = vld [vmem:[%s1863_s8] ss:$0 sm:$0xff]  ;;  %s1599_s8 = scalar_lea.vmem %s1171_s20, 128 }
 0x256   :  { %v863_v25 = vadd.f32 %v1306_v21, %v1284_v18  ;;  %p1600_p12 = scmp.ne.s32.totalorder %s1171_s20, %s1599_s8  ;;  %p1605_p0 = scmp.lt.s32.totalorder %s1599_s8, %s1599_s8 }
 0x258   :  { %v870_v26 = vrot.slane %v863_v25, 4  ;;  %v877_v27 = vmul.f32 %v863_v25, %v863_v25  ;;  %p1606_p1 = por %p1605_p0, %p1604_p13 }
 0x25a   :  { %v871_v28 = vadd.f32 %v870_v26, %v863_v25  ;;  %v878_v29 = vrot.slane %v877_v27, 4  ;;  %p1607_p2 = pnand %p1606_p1, %p1600_p12 }
 0x25c   :  { %v872_v30 = vrot.slane %v871_v28, 2  ;;  %v879_v31 = vadd.f32 %v878_v29, %v877_v27 }
 0x25e   :  { %v873_v32 = vadd.f32 %v872_v30, %v871_v28  ;;  %v880_v33 = vrot.slane %v879_v31, 2  ;;  %v1257_v30 = vld [vmem:[%s1866_s11] ss:$0 sm:$0xff] }
 0x260   :  { %v874_v34 = vrot.slane %v873_v32, 1  ;;  %v881_v35 = vadd.f32 %v880_v33, %v879_v31 }
 0x262   :  { %v875_v36 = vadd.f32 %v874_v34, %v873_v32  ;;  %v882_v37 = vrot.slane %v881_v35, 1 }
 0x264   :  { %v876_v38 = vmul.f32 0.125, %v875_v36  ;;  %v883_v39 = vadd.f32 %v882_v37, %v881_v35 }
 0x266   :  { %v884_v40 = vmul.f32 0.125, %v883_v39  ;;  %v885_v41 = vmul.f32 %v876_v38, %v876_v38  ;;  %v888_v45 = vsub.f32 %v863_v25, %v876_v38  ;;  %v1256_v25 = vld [vmem:[%s1864_s9] ss:$0 sm:$0xff] }
 0x268   :  { %v886_v42 = vsub.f32 %v884_v40, %v885_v41 }
 0x26a   :  { %v887_v43 = vmax.f32 %v886_v42, 0.0 }
 0x26c   :  { %v889_v44 = vadd.f32 1e-05, %v887_v43 }
 0x26e   :  { %1485 = vrsqrt.f32 %v889_v44 }
 0x278   :  { %v1486_v46 = vpop.eup %1485 }
 0x279   :  { %v891_v48 = vmul.f32 %v1486_v46, %v888_v45 }
 0x27b   :  { %v898_v50 = vmul.f32 %v1245_v47, %v891_v48 }
 0x27d   :  { %v905_v2 = vadd.f32 %v1246_v49, %v898_v50 }
 0x27f   :  { %v906_v51 = vmax.f32 %v905_v2, 0.0 }
 0x281   :  { %v907_v52 = vpack.c.bf16 %v906_v51, %v906_v51 }
 0x283   :  { %1345 = vmatmul.mubr.bf16.vlgmr.msra.gmra.mrb[8].mxu0 %v907_v52 }
 0x356   :  { %v1006_v59 = vpop.f32.mrb[8].mxu0 }
 0x357   :  { %v1014_v60 = vrot.slane %v1006_v59, 4  ;;  %v1021_v61 = vmul.f32 %v1006_v59, %v1006_v59  ;;  %v1346_v62 = vpop.f32.mrb[9].mxu0 }
 0x358   :  { %v1009_v9 = vpop.f32.mrb[10].mxu0 }
 0x359   :  { %v1015_v63 = vadd.f32 %v1014_v60, %v1006_v59  ;;  %v1022_v0 = vrot.slane %v1021_v61, 4  ;;  %v1347_v1 = vpop.f32.mrb[11].mxu0 }
 0x35b   :  { %v1016_v4 = vrot.slane %v1015_v63, 2  ;;  %v1023_v6 = vadd.f32 %v1022_v0, %v1021_v61 }
 0x35d   :  { %v1017_v7 = vadd.f32 %v1016_v4, %v1015_v63  ;;  %v1024_v10 = vrot.slane %v1023_v6, 2 }
 0x35f   :  { %v1018_v11 = vrot.slane %v1017_v7, 1  ;;  %v1025_v12 = vadd.f32 %v1024_v10, %v1023_v6 }
 0x361   :  { %v1019_v13 = vadd.f32 %v1018_v11, %v1017_v7  ;;  %v1026_v14 = vrot.slane %v1025_v12, 1 }
 0x363   :  { %v1020_v15 = vmul.f32 0.125, %v1019_v13  ;;  %v1027_v16 = vadd.f32 %v1026_v14, %v1025_v12 }
 0x365   :  { %v1028_v5 = vmul.f32 0.125, %v1027_v16  ;;  %v1029_v17 = vmul.f32 %v1020_v15, %v1020_v15  ;;  %v1032_v21 = vsub.f32 %v1006_v59, %v1020_v15 }
 0x367   :  { %v1030_v18 = vsub.f32 %v1028_v5, %v1029_v17 }
 0x369   :  { %v1031_v19 = vmax.f32 %v1030_v18, 0.0 }
 0x36b   :  { %v1033_v20 = vadd.f32 1e-05, %v1031_v19 }
 0x36d   :  { %1487 = vrsqrt.f32 %v1033_v20 }
 0x377   :  { %v1488_v22 = vpop.eup %1487 }
 0x378   :  { %v1035_v24 = vmul.f32 %v1488_v22, %v1032_v21 }
 0x37a   :  { %v1042_v26 = vmul.f32 %v1255_v23, %v1035_v24 }
 0x37c   :  { %v1049_v27 = vadd.f32 %v1256_v25, %v1042_v26 }
 0x37e   :  { %v1050_v28 = vmax.f32 %v1049_v27, 0.0 }
 0x380   :  { %v1051_v29 = vpack.c.bf16 %v1050_v28, %v1050_v28 }
 0x382   :  { %1365 = vmatmul.mubr.bf16.vlgmr.msra.gmra.mrb[8].mxu1 %v1051_v29 }
 0x455   :  { %v1157_v31 = vpop.f32.mrb[8].mxu1 }
 0x456   :  { %v1158_v32 = vadd.f32 %v1257_v30, %v1157_v31  ;;  %v1366_v33 = vpop.f32.mrb[9].mxu1 }
 0x457   :  { %v1160_v34 = vpop.f32.mrb[10].mxu1 }
 0x458   :  { %1163 = vst [vmem:[#allocation11] sm:$0xff] %v1158_v32  ;;  %v1367_v35 = vpop.f32.mrb[11].mxu1 }
 0x459   :  { %1610 = shalt.err (!%p1607_p2)
}
 0x45a   :  { %s1611_s11 = scalar_lea.hbm %s1867_s12, 128 }
 0x45b   :  { %p1612_p3 = scmp.ne.s32.totalorder %s1867_s12, %s1611_s11  ;;  %p1615_p4 = scmp.lt.u32.totalorder %s1611_s11, %s1867_s12 }
 0x45d   :  { %p1617_p5 = pnand %p1615_p4, %p1612_p3 }
 0x45f   :  { %1620 = shalt.err (!%p1617_p5)
}
 0x460   :  { %1173 = dma.vmem_to_hbm [thread:$0]  %s1171_s20, 128, %s1867_s12, [#allocation4]  }
 0x461   :  { %1627 = dma.done.wait [#allocation4], 128  }
 0x462   :  { %1628 = vsyncadd [#allocation4], 4294967168 }
 0x463   :  { %1177 = vsyncpa [#allocation3], 1 }
 0x464   :  { %1178 = vsyncpa [#allocation6], 1 }
 0x465   :  { %1179 = vsyncpa [#allocation9], 1 }
 0x466   :  { %1180 = vsyncpa [#allocation4], 1 }

</bundles_post_ra>
